<compile_context>
chip_gen: v7x
topology: tpu7x:2x2x1
jax: 0.10.0
libtpu: 0.0.40
codegen_flags: <defaults>
</compile_context>

<pallas_src>
import jax
import jax.numpy as jnp
from jax.experimental import pallas as pl
from jax.experimental.pallas import tpu as pltpu

N_FFT = 64
HOP = 16
N_BINS = N_FFT // 2 + 1           # 33
EPS = 1e-14
SUB = 16                          # sublane multiple (bf16-safe; also valid for f32)


def _round_up(x, m):
    return ((x + m - 1) // m) * m


def _cdiv(a, b):
    return -(-a // b)


def _dft_matrices(n_fft, n_bins):
    # Hann window folded directly into the real/imag DFT matrices (f32).
    n = jnp.arange(n_fft, dtype=jnp.float32)
    win = 0.5 - 0.5 * jnp.cos(2.0 * jnp.pi * n / n_fft)
    k = jnp.arange(n_bins, dtype=jnp.float32)
    ang = 2.0 * jnp.pi * n[:, None] * k[None, :] / n_fft
    cos_mat = win[:, None] * jnp.cos(ang)
    sin_mat = -(win[:, None] * jnp.sin(ang))
    return cos_mat, sin_mat


def _packed_dft_matrix(n_fft, n_bins, frames_per_row, dtype):
    # Block-diagonal fused DFT matrix, shape (P*n_fft, 2*P*n_fft):
    #   frame g's cos block -> lanes [g*n_fft, g*n_fft + n_bins)
    #   frame g's sin block -> lanes [N/2 + g*n_fft, N/2 + g*n_fft + n_bins)
    # so roll(result, shift=N/2) pairs re/im of the same frame, and the
    # "second half" lanes become exact duplicates of the magnitudes.
    P = frames_per_row
    cos_m, sin_m = _dft_matrices(n_fft, n_bins)
    K = P * n_fft
    N = 2 * P * n_fft
    half = N // 2
    cs = jnp.zeros((K, N), jnp.float32)
    for g in range(P):
        r0 = g * n_fft
        c0 = g * n_fft
        cs = cs.at[r0:r0 + n_fft, c0:c0 + n_bins].set(cos_m)
        cs = cs.at[r0:r0 + n_fft, half + c0:half + c0 + n_bins].set(sin_m)
    return cs.astype(dtype)


def _frame_no_gather(x, n_fft, hop):
    # x: [Nb, S] -> [Nb, F, n_fft] via hop-reshape + shifted slices + concat
    # (dense copies only, no XLA gather).
    Nb, S = x.shape
    F = (S - n_fft) // hop + 1
    R = n_fft // hop
    H = F + R - 1
    hops = x[:, :H * hop].reshape(Nb, H, hop)
    parts = [hops[:, j:j + F, :] for j in range(R)]
    return jnp.concatenate(parts, axis=2)


def _make_kernel(distance_metric, half_lanes):
    use_l2 = distance_metric == "l2"

    def kernel(x_ref, cs_ref, out_ref):
        # x_ref: (2, tile_rows, K) bf16  (slab 0 = y_hat frames, slab 1 = y)
        _, tr, kdim = x_ref.shape
        lhs = x_ref[...].reshape(2 * tr, kdim)          # free leading-dim merge
        # Single MXU matmul per step: re in lanes [0, N/2), im in [N/2, N).
        r = jnp.dot(lhs, cs_ref[...], preferred_element_type=jnp.float32)
        # Swap the two N/2-lane halves (multiple-of-128 roll -> cheap vreg
        # permutation for P>=2) so im lines up under re of the SAME frame.
        r_sw = pltpu.roll(r, shift=half_lanes, axis=1)
        mag = jnp.sqrt(r * r + r_sw * r_sw + jnp.float32(EPS))
        diff = mag[:tr] - mag[tr:]                      # y_hat mags - y mags
        term = diff * diff if use_l2 else jnp.abs(diff)
        # No lane mask: real bins are counted exactly twice (first + mirrored
        # half), every other lane and every zero-padded frame contributes 0.
        # Wrapper divides by 2*M*n_bins.
        out_ref[...] = jnp.sum(term.reshape(tr // 8, 8, -1), axis=0)

    return kernel


def stft_magnitude_loss(y_hat, y, distance_metric="l2", use_log=False,
                        n_fft=N_FFT, hop=HOP, frames_per_row=4,
                        tile_rows=1024, compute_dtype=jnp.bfloat16):
    """y_hat, y: [B, S, 1]. Returns scalar loss (float32)."""
    if distance_metric not in ("l1", "l2"):
        raise ValueError("distance_metric must be one of ['l1', 'l2']")
    assert n_fft % hop == 0
    P = frames_per_row
    n_bins = n_fft // 2 + 1
    K = P * n_fft
    N = 2 * P * n_fft
    assert N % 128 == 0, "frames_per_row * 2 * n_fft must be lane-dense"

    # forward(): squeeze(-1)
    y_hat = jnp.squeeze(y_hat, axis=-1)
    y = jnp.squeeze(y, axis=-1)
    B, S = y_hat.shape
    F = (S - n_fft) // hop + 1
    M = B * F                                  # true frame count

    # Row / tile geometry: P frames packed per LHS row; rows padded so the grid
    # divides evenly; tile capped so the parallel grid has >= 2 steps (v7x).
    rows = _cdiv(M, P)
    tile = _round_up(min(tile_rows, rows), SUB)
    if rows > SUB:
        tile = min(tile, _round_up(_cdiv(rows, 2), SUB))
    rows_pad = _round_up(rows, tile)
    n_steps = rows_pad // tile
    M_pad = rows_pad * P

    # Frame both signals at once (bf16 dense copies, no gather), pad with zero
    # frames (they yield identical sqrt(eps) magnitudes for both signals ->
    # diff == 0), then pack P consecutive frames per row.
    sig = jnp.stack([y_hat, y], axis=0).astype(compute_dtype)       # (2, B, S)
    frames = _frame_no_gather(sig.reshape(2 * B, S), n_fft, hop)    # (2B, F, n_fft)
    frames = frames.reshape(2, M, n_fft)
    frames = jnp.pad(frames, ((0, 0), (0, M_pad - M), (0, 0)))
    stacked = frames.reshape(2, rows_pad, K)                        # (2, rows_pad, K)

    cs = _packed_dft_matrix(n_fft, n_bins, P, compute_dtype)        # (K, N)

    kernel = _make_kernel(distance_metric, N // 2)

    # VMEM: input block (2, tile, K) bf16 double-buffered ~2*tile*K*2*2 bytes
    # (~4 MiB at tile=1024, P=4) + cs (K, N) bf16 -> well under scoped limits.
    partials = pl.pallas_call(
        kernel,
        out_shape=jax.ShapeDtypeStruct((n_steps * 8, N), jnp.float32),
        grid=(n_steps,),
        in_specs=[
            pl.BlockSpec((2, tile, K), lambda i: (0, i, 0)),
            pl.BlockSpec((K, N), lambda i: (0, 0)),   # resident constant
        ],
        out_specs=pl.BlockSpec((8, N), lambda i: (i, 0)),
        compiler_params=pltpu.CompilerParams(
            dimension_semantics=("parallel",)),
    )(stacked, cs)

    # Each real (frame, bin) is counted exactly twice; padding contributes 0.
    loss = jnp.sum(partials) / jnp.float32(2 * M * n_bins)
    if use_log:
        loss = 10.0 * jnp.log10(loss)
    return loss


# ----------------------------- reference (plain JAX, f32) ------------------------------

def _frame_gather(x, n_fft, hop):
    B, S = x.shape
    F = (S - n_fft) // hop + 1
    idx = jnp.arange(F)[:, None] * hop + jnp.arange(n_fft)[None, :]
    return x[:, idx]


def _reference(y_hat, y, distance_metric="l2", use_log=False):
    yh = jnp.squeeze(y_hat, -1).astype(jnp.float32)
    yy = jnp.squeeze(y, -1).astype(jnp.float32)
    cos_m, sin_m = _dft_matrices(N_FFT, N_BINS)

    def feats(x):
        fr = _frame_gather(x, N_FFT, HOP)
        re = jnp.dot(fr, cos_m)
        im = jnp.dot(fr, sin_m)
        return jnp.sqrt(re * re + im * im + EPS)

    a, b = feats(yh), feats(yy)
    d = a - b
    loss = jnp.mean(d * d) if distance_metric == "l2" else jnp.mean(jnp.abs(d))
    if use_log:
        loss = 10.0 * jnp.log10(loss)
    return loss


if __name__ == "__main__":
    key = jax.random.PRNGKey(0)
    k1, k2 = jax.random.split(key)
    B = 2
    F = 100
    S = (F - 1) * HOP + N_FFT            # 1648 samples -> 100 frames per batch row
    y_hat = jax.random.normal(k1, (B, S, 1), dtype=jnp.float32)
    y = jax.random.normal(k2, (B, S, 1), dtype=jnp.float32)

    # Default module config: distance_metric='l2', use_log=False.
    # Defaults (P=4, tile_rows=1024 auto-capped) -> 2 parallel grid steps with a
    # zero-padded last tile (exercises padding + megacore path).
    loss = jax.block_until_ready(
        stft_magnitude_loss(y_hat, y, distance_metric="l2", use_log=False))
    ref = _reference(y_hat, y, distance_metric="l2", use_log=False)
    assert jnp.allclose(loss, ref, rtol=5e-3, atol=1e-3), (loss, ref)

    # l1 + use_log path with 2-frame packing and a small tile (multi-step grid).
    loss_l1 = jax.block_until_ready(
        stft_magnitude_loss(y_hat, y, distance_metric="l1", use_log=True,
                            frames_per_row=2, tile_rows=16))
    ref_l1 = _reference(y_hat, y, distance_metric="l1", use_log=True)
    assert jnp.allclose(loss_l1, ref_l1, rtol=5e-3, atol=1e-3), (loss_l1, ref_l1)

    print("KERNEL_OK")
</pallas_src>

<mosaic_0001>
module attributes {stable_mosaic.version = 11 : i64} {
  func.func @kernel(%arg0: i32, %arg1: memref<2x32x256xbf16, #tpu.memory_space<vmem>>, %arg2: memref<256x512xbf16, #tpu.memory_space<vmem>>, %arg3: memref<8x512xf32, #tpu.memory_space<vmem>>) attributes {dimension_semantics = [#tpu.dimension_semantics<parallel>], iteration_bounds = array<i64: 2>, scalar_prefetch = 0 : i64, scratch_operands = 0 : i64, tpu.core_type = #tpu.core_type<tc>, window_params = [{transform_indices = @transform_0, window_bounds = array<i64: 2, 32, 256>}, {pipeline_mode = #tpu.pipeline_mode<synchronous>, transform_indices = @transform_1, window_bounds = array<i64: 256, 512>}, {transform_indices = @transform_2, window_bounds = array<i64: 8, 512>}]} {
    %c0 = arith.constant 0 : index
    %c0_0 = arith.constant 0 : index
    %c0_1 = arith.constant 0 : index
    %0 = vector.load %arg1[%c0, %c0_0, %c0_1] : memref<2x32x256xbf16, #tpu.memory_space<vmem>>, vector<2x32x256xbf16>
    %1 = vector.shape_cast %0 : vector<2x32x256xbf16> to vector<64x256xbf16>
    %c0_2 = arith.constant 0 : index
    %c0_3 = arith.constant 0 : index
    %2 = vector.load %arg2[%c0_2, %c0_3] : memref<256x512xbf16, #tpu.memory_space<vmem>>, vector<256x512xbf16>
    %cst = arith.constant dense<0.000000e+00> : vector<64x512xf32>
    %3 = tpu.matmul %1, %2, %cst {dimension_numbers = #tpu.dot_dimension_numbers<[1], [0], [0], [1], [0, 0, 1, 1], [], []>} : vector<64x256xbf16>, vector<256x512xbf16>, vector<64x512xf32> -> vector<64x512xf32>
    %c256_i32 = arith.constant 256 : i32
    %4 = tpu.dynamic_rotate %3 by %c256_i32 dim 1 : vector<64x512xf32>, i32 -> vector<64x512xf32>
    %5 = arith.mulf %3, %3 : vector<64x512xf32>
    %6 = arith.mulf %4, %4 : vector<64x512xf32>
    %7 = arith.addf %5, %6 : vector<64x512xf32>
    %cst_4 = arith.constant 9.99999982E-15 : f32
    %8 = vector.broadcast %cst_4 : f32 to vector<64x512xf32>
    %9 = arith.addf %7, %8 : vector<64x512xf32>
    %10 = math.sqrt %9 : vector<64x512xf32>
    %11 = vector.extract_strided_slice %10 {offsets = [0, 0], sizes = [32, 512], strides = [1, 1]} : vector<64x512xf32> to vector<32x512xf32>
    %12 = vector.extract_strided_slice %10 {offsets = [32, 0], sizes = [32, 512], strides = [1, 1]} : vector<64x512xf32> to vector<32x512xf32>
    %13 = arith.subf %11, %12 : vector<32x512xf32>
    %14 = arith.mulf %13, %13 : vector<32x512xf32>
    %15 = vector.shape_cast %14 : vector<32x512xf32> to vector<4x8x512xf32>
    %cst_5 = arith.constant dense<0.000000e+00> : vector<8x512xf32>
    %16 = vector.multi_reduction <add>, %15, %cst_5 [0] : vector<4x8x512xf32> to vector<8x512xf32>
    %c0_6 = arith.constant 0 : index
    %c0_7 = arith.constant 0 : index
    %17 = vector.load %arg3[%c0_6, %c0_7] : memref<8x512xf32, #tpu.memory_space<vmem>>, vector<8x512xf32>
    tpu.vector_store %arg3[%c0_6, %c0_7], %16 {strides = array<i32>} : memref<8x512xf32, #tpu.memory_space<vmem>>, vector<8x512xf32>,
    return
  }
  func.func @transform_0(%arg0: i32) -> (i32, i32, i32) {
    %c0_i32 = arith.constant 0 : i32
    %c0_i32_0 = arith.constant 0 : i32
    %c0_i32_1 = arith.constant 0 : i32
    return %c0_i32, %arg0, %c0_i32_0 : i32, i32, i32
  }
  func.func @transform_1(%arg0: i32) -> (i32, i32) {
    %c0_i32 = arith.constant 0 : i32
    %c0_i32_0 = arith.constant 0 : i32
    %c0_i32_1 = arith.constant 0 : i32
    return %c0_i32, %c0_i32_0 : i32, i32
  }
  func.func @transform_2(%arg0: i32) -> (i32, i32) {
    %c0_i32 = arith.constant 0 : i32
    %c0_i32_0 = arith.constant 0 : i32
    return %arg0, %c0_i32 : i32, i32
  }
}

</mosaic_0001>

<bundles_post_ra>
// kernel: tpu_custom_call.1
= control target key start
LH: loop header
LB: loop body
LE: loop exit
PB: predicated region body
PF: predicated region fallthrough
CT: control target
= control target key end

     0   :  { %7 = vsyncpa [#allocation3], 0  ;;  %s1855_s0 = inlined_call_operand.hbm [shape: bf16[2,64,256], index: 0, kind: input, shape index: {}]   ;;  %s1856_s1 = inlined_call_operand.hbm [shape: bf16[256,512], index: 1, kind: input, shape index: {}]   ;;  %s1857_s2 = inlined_call_operand.hbm [shape: f32[16,512], index: 2, kind: output, shape index: {}]  }
   0x1   :  { %9 = vsyncpa [#allocation3 + $0x1], 0 }
   0x2   :  { %10 = vsyncpa [#allocation6], 0 }
   0x3   :  { %11 = vsyncpa [#allocation4], 0 }
   0x4   :  { %13 = vsyncpa [#allocation4 + $0x1], 0  ;;  %s1505_s9 = smov 0   ;;  %s1507_s10 = smov 0  }
   0x5   :  { %s1509_s11 = smov 0   ;;  %s1511_s12 = smov 0  }
   0x6 LB: > { %s1526_s13 = sadd.s32 4294967295, %s1478_s12   ;;  %s1079_s14 = sadd.s32 4294967294, %s1478_s12   ;;  %s1478_s12 = sphi %s1511_s12, %s1879_s12   ;;  %s1474_s11 = sphi %s1509_s11, %s1878_s11   ;;  %s1470_s10 = sphi %s1507_s10, %s1877_s10   ;;  %s1466_s9 = sphi %s1505_s9, %s1876_s9  }
   0x7   : > { %s1530_s15 = sadd.s32 1, %s1478_s12   ;;  %s26_s16 = sadd.s32 1, %s1474_s11 }
   0x8   : > { %s23_s17 = ssub.s32 %s1478_s12, %s1530_s15  ;;  %p33_p0 = scmp.ne.s32.totalorder %s1474_s11, %s1470_s10 }
   0x9   : > { %p24_p1 = scmp.eq.s32.totalorder %s23_s17, 0  ;;  %p34_p2 = scmp.eq.s32.totalorder %s1478_s12, 0 }
   0xa   : > { %p39_p3 = scmp.ne.s32.totalorder %s1470_s10, %s1466_s9  ;;  %p1858_p4 = scmp.eq.s32.totalorder %s1526_s13, 0 }
   0xb   : > { %s1542_s18 = scalar_select %p24_p1, %s1474_s11, %s26_s16  }
   0xc   : > { %p1544_p5 = por %p34_p2, %p33_p0  ;;  %p1550_p6 = por %p1858_p4, %p39_p3 }
   0xd   : > { %p84_p7 = scmp.eq.s32.totalorder %s1526_s13, 1  ;;  %p90_p8 = scmp.eq.s32.totalorder %s1079_s14, 1 }
   0xe   : > { %s1863_s19 = scalar_select %p1544_p5, 1, 0 }
   0xf   : > { %s1864_s20 = scalar_select %p1550_p6, 1, 0 }
  0x10   : > { %p1080_p9 = scmp.ge.s32.totalorder %s1478_s12, 1  ;;  %p97_p10 = scmp.lt.s32.totalorder %s1478_s12, 3 }
  0x11   : > { %p1557_p11 = por %p84_p7, %p33_p0  ;;  %p1561_p12 = por %p90_p8, %p39_p3 }
  0x12   : > { %p1565_p13 = pnand %p1080_p9, %p97_p10  ;;  %s1480_s24 = smov [#allocation5]  }
  0x13   : > { %s1865_s21 = scalar_select %p1557_p11, 1, 0 }
  0x14   : > { %s1866_s22 = scalar_select %p1561_p12, 1, 0 }
  0x15   : > { %s1867_s23 = scalar_select %p1565_p13, 1, 0 }
  0x16   : > { %p1188_p1 = pneg %p1565_p13  ;;  %s109_s25 = sshll.u32 %s1480_s24, 4  ;;  %s110_s25 = int_to_ptr.vmem [resolvable:$true] %s109_s25 }
  0x17   : > { %s1380_s29 = scalar_lea.hbm %s1856_s1, 8192 }
  0x18   : > { %p1573_p2 = pnand %p1188_p1, %p1858_p4  ;;  %p1381_p0 = scmp.ne.s32.totalorder %s1856_s1, %s1380_s29 }
  0x19   : > { %p1387_p9 = scmp.lt.u32.totalorder %s1380_s29, %s1856_s1 }
  0x1a   : > { %p1382_p3 = pneg %p1573_p2 }
  0x1c   : > { %p1383_p7 = pnand %p1382_p3, %p1381_p0 }
  0x1e   : > { %p1384_p8 = pneg %p1383_p7 }
  0x20   : > { %p1389_p10 = pnand %p1387_p9, %p1384_p8 }
  0x22   : > { %1392 = shalt.err (!%p1389_p10)
}
  0x23   : > { %s1393_s6 = scalar_lea.vmem %s110_s25, 8192  ;;  %p1401_p11 = scmp.lt.s32.totalorder %s110_s25, %s110_s25 }
  0x24   : > { %p1394_p1 = scmp.ne.s32.totalorder %s110_s25, %s1393_s6  ;;  %p1402_p6 = scmp.lt.s32.totalorder %s1393_s6, %s1393_s6 }
  0x26   : > { %p1396_p4 = pnand %p1394_p1, %p1382_p3  ;;  %p1403_p13 = por %p1402_p6, %p1401_p11 }
  0x28   : > { %p1397_p12 = pneg %p1396_p4 }
  0x2a   : > { %p1404_p5 = pnand %p1403_p13, %p1397_p12 }
  0x2c   : > { %1407 = shalt.err (!%p1404_p5)
}
  0x2d   : > { %s1481_s7 = smov 256   ;;  %s1482_s8 = smov 16  }
  0x2e   : > { %1191 = dma.hbm_to_vmem [thread:$0]  (!%p1573_p2), %s1856_s1, 8192, %s110_s25, [#allocation6], %s1481_s7, %s1481_s7, %s1482_s8  }
  0x2f   : > { %p1082_p0 = scmp.ge.s32.totalorder %s1478_s12, 2 }
  0x31   : > { %119 = sbr.rel (%p1082_p0) target bundleno = 71 (0x47), region = 20 }
  0x38   : > { %s123_s17 = sand.u32 1, %s1474_s11   ;;  %s1171_s24 = sshll.u32 %s1478_s12, 9 }
  0x39   : > { %s1083_s26 = sshll.u32 %s123_s17, 6  ;;  %s134_s25 = scalar_lea.hbm %s1855_s0, %s1171_s24 }
  0x3a   : > { %p1869_p4 = scmp.ne.s32.totalorder %s1863_s19, 0  ;;  %s127_s30 = scalar_lea.vmem [#allocation2], %s1083_s26 }
  0x3b   : > { %s147_s3 = sshll.u32 %s127_s30, 4  ;;  %s1483_s5 = smov 1024   ;;  %s148_s3 = int_to_ptr.vmem [resolvable:$true] %s147_s3 }
  0x3c   : > { %s1175_s29 = scalar_select %p1869_p4, [#allocation0], [#allocation10] }
  0x3d   : > { %1176 = sst [smem:[#allocation9]] (%p1869_p4), %s1483_s5  ;;  %s1484_s6 = smov 512  }
  0x3e   : > { %s139_s4 = sld [smem:[%s1175_s29]]   ;;  %s1485_s7 = smov 4  }
  0x3f   : > { %1177 = sst [smem:[#allocation9 + $0x1]] (%p1869_p4), %s1484_s6  ;;  %s1486_s8 = smov 128  }
  0x40   : > { %1178 = sst [smem:[#allocation9 + $0x2]] (%p1869_p4), %s1485_s7  ;;  %s1487_s16 = smov 8  }
  0x41   : > { %1179 = sst [smem:[#allocation9 + $0x3]] (%p1869_p4), %s1486_s8  ;;  %s124_s26 = scalar_lea.sflag [#allocation3], %s123_s17 }
  0x42   : > { %1180 = sst [smem:[#allocation9 + $0x4]] (%p1869_p4), %s1486_s8  ;;  %s1488_s27 = smov [#allocation8]  }
  0x43   : > { %1181 = sst [smem:[#allocation9 + $0x5]] (%p1869_p4), %s1487_s16 }
  0x44   : > { %s1087_s14 = sshll.u32 %s139_s4, 26 }
  0x45   : > { %s1088_s24 = sadd.s32 134217728, %s1087_s14 }
  0x46   : > { %1182 = dma.general (%p1869_p4), %s134_s25, 1024, %s148_s3, %s124_s26, %s1488_s27, [#allocation9], %s1088_s24, 0  }
  0x47 PF: > { %p1870_p5 = scmp.ne.s32.totalorder %s1867_s23, 0 }
  0x48   : > { %s1620_s28 = sand.u32 (!%p1870_p5), 1, %s1470_s10   ;;  %p1871_p6 = scmp.ne.s32.totalorder (!%p1870_p5), %s1864_s20, 0 }
  0x49   : > { %172 = sbr.rel (%p1870_p5) target bundleno = 433 (0x1b1), region = 28  ;;  %s1090_s29 = sshll.u32 (!%p1870_p5), %s1620_s28, 6 }
  0x4a   : > { %s175_s30 = scalar_lea.sflag (!%p1870_p5), [#allocation3], %s1620_s28  ;;  %s1624_s4 = scalar_lea.vmem (!%p1870_p5), [#allocation2], %s1090_s29 }
  0x50   : > { %1453 = dma.done.wait (%p1871_p6), %s175_s30, 1024  }
  0x51   : > { %1455 = vsyncadd (%p1871_p6), %s175_s30, 4294966272  ;;  %p1872_p11 = scmp.eq.s32.totalorder %s1526_s13, 0 }
  0x53   : > { %1457 = dma.done.wait (%p1872_p11), [#allocation6], 8192   ;;  %p1873_p12 = pmov %p1872_p11 }
  0x54   : > { %v1240_v0 = vld [vmem:[#allocation5 + $0x4] ss:$16 sps:$4 sm:$0xff]   ;;  %v1242_v1 = vld [vmem:[#allocation5 + $0xc] ss:$16 sps:$4 sm:$0xff]   ;;  %v1244_v2 = vld [vmem:[#allocation5] ss:$16 sps:$4 sm:$0xff]  }
  0x55   : > { %1459 = vsyncadd (%p1873_p12), [#allocation6], 4294959104  ;;  %636 = vmatprep.subr.bf16.mxu0 %v1240_v0  ;;  %v1245_v3 = vld [vmem:[#allocation5 + $0x8] ss:$16 sps:$4 sm:$0xff]   ;;  %709 = vmatprep.subr.bf16.mxu1 %v1242_v1  ;;  %v1246_v4 = vld [vmem:[#allocation5 + $0x24] ss:$16 sps:$4 sm:$0xff]  }
  0x56   : > { %637 = vmatpush1.bf16.msra.mxu0 %v1244_v2  ;;  %710 = vmatpush1.bf16.msra.mxu1 %v1245_v3  ;;  %v1248_v5 = vld [vmem:[#allocation5 + $0x2c] ss:$16 sps:$4 sm:$0xff]   ;;  %v1250_v6 = vld [vmem:[#allocation5 + $0x20] ss:$16 sps:$4 sm:$0xff]   ;;  %v1251_v7 = vld [vmem:[#allocation5 + $0x28] ss:$16 sps:$4 sm:$0xff]  }
  0x57   : > { %638 = vmatprep.subr.bf16.mxu0 %v1246_v4  ;;  %711 = vmatprep.subr.bf16.mxu1 %v1248_v5  ;;  %v1252_v8 = vld [vmem:[#allocation5 + $0x44] ss:$16 sps:$4 sm:$0xff]   ;;  %v1254_v9 = vld [vmem:[#allocation5 + $0x4c] ss:$16 sps:$4 sm:$0xff]   ;;  %v1256_v10 = vld [vmem:[#allocation5 + $0x40] ss:$16 sps:$4 sm:$0xff]  }
  0x58   : > { %v1257_v11 = vld [vmem:[#allocation5 + $0x48] ss:$16 sps:$4 sm:$0xff]   ;;  %v1258_v12 = vld [vmem:[#allocation5 + $0x64] ss:$16 sps:$4 sm:$0xff]   ;;  %v1260_v13 = vld [vmem:[#allocation5 + $0x6c] ss:$16 sps:$4 sm:$0xff]  }
  0x59   : > { %v1262_v14 = vld [vmem:[#allocation5 + $0x60] ss:$16 sps:$4 sm:$0xff]   ;;  %v1263_v15 = vld [vmem:[#allocation5 + $0x68] ss:$16 sps:$4 sm:$0xff]   ;;  %v1264_v16 = vld [vmem:[#allocation5 + $0x84] ss:$16 sps:$4 sm:$0xff]  }
  0x5a   : > { %639 = vmatpush1.bf16.msra.mxu0 %v1250_v6  ;;  %712 = vmatpush1.bf16.msra.mxu1 %v1251_v7  ;;  %v1266_v17 = vld [vmem:[#allocation5 + $0x8c] ss:$16 sps:$4 sm:$0xff]   ;;  %v1268_v18 = vld [vmem:[#allocation5 + $0x80] ss:$16 sps:$4 sm:$0xff]   ;;  %v1269_v19 = vld [vmem:[#allocation5 + $0x88] ss:$16 sps:$4 sm:$0xff]  }
  0x5b   : > { %640 = vmatprep.subr.bf16.mxu0 %v1252_v8  ;;  %713 = vmatprep.subr.bf16.mxu1 %v1254_v9  ;;  %v1270_v20 = vld [vmem:[#allocation5 + $0xa4] ss:$16 sps:$4 sm:$0xff]   ;;  %v1272_v21 = vld [vmem:[#allocation5 + $0xac] ss:$16 sps:$4 sm:$0xff]   ;;  %v1274_v22 = vld [vmem:[#allocation5 + $0xa0] ss:$16 sps:$4 sm:$0xff]  }
  0x5c   : > { %v1275_v23 = vld [vmem:[#allocation5 + $0xa8] ss:$16 sps:$4 sm:$0xff]   ;;  %v1276_v24 = vld [vmem:[#allocation5 + $0xc4] ss:$16 sps:$4 sm:$0xff]   ;;  %v1278_v25 = vld [vmem:[#allocation5 + $0xcc] ss:$16 sps:$4 sm:$0xff]  }
  0x5d   : > { %v1280_v26 = vld [vmem:[#allocation5 + $0xc0] ss:$16 sps:$4 sm:$0xff]   ;;  %v1281_v27 = vld [vmem:[#allocation5 + $0xc8] ss:$16 sps:$4 sm:$0xff]   ;;  %v1282_v28 = vld [vmem:[#allocation5 + $0xe4] ss:$16 sps:$4 sm:$0xff]  }
  0x5e   : > { %641 = vmatpush1.bf16.msra.mxu0 %v1256_v10  ;;  %714 = vmatpush1.bf16.msra.mxu1 %v1257_v11  ;;  %v1284_v29 = vld [vmem:[#allocation5 + $0xec] ss:$16 sps:$4 sm:$0xff]   ;;  %v1286_v30 = vld [vmem:[#allocation5 + $0xe0] ss:$16 sps:$4 sm:$0xff]   ;;  %v1287_v31 = vld [vmem:[#allocation5 + $0xe8] ss:$16 sps:$4 sm:$0xff]  }
  0x5f   : > { %642 = vmatprep.subr.bf16.mxu0 %v1258_v12  ;;  %715 = vmatprep.subr.bf16.mxu1 %v1260_v13  ;;  %v1288_v32 = vld [vmem:[#allocation5 + $0x104] ss:$16 sps:$4 sm:$0xff]   ;;  %v1290_v33 = vld [vmem:[#allocation5 + $0x10c] ss:$16 sps:$4 sm:$0xff]   ;;  %v1292_v34 = vld [vmem:[#allocation5 + $0x100] ss:$16 sps:$4 sm:$0xff]  }
  0x60   : > { %v1293_v35 = vld [vmem:[#allocation5 + $0x108] ss:$16 sps:$4 sm:$0xff]   ;;  %v1294_v36 = vld [vmem:[#allocation5 + $0x124] ss:$16 sps:$4 sm:$0xff]   ;;  %v1296_v37 = vld [vmem:[#allocation5 + $0x12c] ss:$16 sps:$4 sm:$0xff]  }
  0x61   : > { %v1298_v38 = vld [vmem:[#allocation5 + $0x120] ss:$16 sps:$4 sm:$0xff]   ;;  %v1299_v39 = vld [vmem:[#allocation5 + $0x128] ss:$16 sps:$4 sm:$0xff]   ;;  %v1300_v40 = vld [vmem:[#allocation5 + $0x144] ss:$16 sps:$4 sm:$0xff]  }
  0x62   : > { %643 = vmatpush1.bf16.msra.mxu0 %v1262_v14  ;;  %716 = vmatpush1.bf16.msra.mxu1 %v1263_v15  ;;  %v1302_v41 = vld [vmem:[#allocation5 + $0x14c] ss:$16 sps:$4 sm:$0xff]   ;;  %v1304_v42 = vld [vmem:[#allocation5 + $0x140] ss:$16 sps:$4 sm:$0xff]   ;;  %v1305_v43 = vld [vmem:[#allocation5 + $0x148] ss:$16 sps:$4 sm:$0xff]  }
  0x63   : > { %644 = vmatprep.subr.bf16.mxu0 %v1264_v16  ;;  %717 = vmatprep.subr.bf16.mxu1 %v1266_v17  ;;  %v1306_v44 = vld [vmem:[#allocation5 + $0x164] ss:$16 sps:$4 sm:$0xff]   ;;  %v1308_v45 = vld [vmem:[#allocation5 + $0x16c] ss:$16 sps:$4 sm:$0xff]   ;;  %v1310_v46 = vld [vmem:[#allocation5 + $0x160] ss:$16 sps:$4 sm:$0xff]  }
  0x64   : > { %v1311_v47 = vld [vmem:[#allocation5 + $0x168] ss:$16 sps:$4 sm:$0xff]   ;;  %v1338_v48 = vld [vmem:[%s1624_s4 + $0x4] ss:$8 sps:$4 sm:$0xff]   ;;  %v1316_v51 = vld [vmem:[#allocation5 + $0x180] ss:$16 sps:$4 sm:$0xff]  }
  0x65   : > { %v1312_v49 = vld [vmem:[#allocation5 + $0x184] ss:$16 sps:$4 sm:$0xff]   ;;  %v1314_v50 = vld [vmem:[#allocation5 + $0x18c] ss:$16 sps:$4 sm:$0xff]   ;;  %668 = vmatprep.mubr.bf16.mxu0 %v1338_v48  ;;  %741 = vmatprep.mubr.bf16.mxu1 %v1338_v48  ;;  %v1317_v52 = vld [vmem:[#allocation5 + $0x188] ss:$16 sps:$4 sm:$0xff]  }
  0x66   : > { %645 = vmatpush1.bf16.msra.mxu0 %v1268_v18  ;;  %718 = vmatpush1.bf16.msra.mxu1 %v1269_v19  ;;  %v1318_v53 = vld [vmem:[#allocation5 + $0x1a4] ss:$16 sps:$4 sm:$0xff]   ;;  %v1320_v54 = vld [vmem:[#allocation5 + $0x1ac] ss:$16 sps:$4 sm:$0xff]   ;;  %v1322_v55 = vld [vmem:[#allocation5 + $0x1a0] ss:$16 sps:$4 sm:$0xff]  }
  0x67   : > { %646 = vmatprep.subr.bf16.mxu0 %v1270_v20  ;;  %719 = vmatprep.subr.bf16.mxu1 %v1272_v21  ;;  %v1323_v56 = vld [vmem:[#allocation5 + $0x1a8] ss:$16 sps:$4 sm:$0xff]   ;;  %v1324_v57 = vld [vmem:[#allocation5 + $0x1c4] ss:$16 sps:$4 sm:$0xff]   ;;  %v1326_v58 = vld [vmem:[#allocation5 + $0x1cc] ss:$16 sps:$4 sm:$0xff]  }
  0x68   : > { %v1328_v59 = vld [vmem:[#allocation5 + $0x1c0] ss:$16 sps:$4 sm:$0xff]   ;;  %v1329_v60 = vld [vmem:[#allocation5 + $0x1c8] ss:$16 sps:$4 sm:$0xff]   ;;  %v1330_v61 = vld [vmem:[#allocation5 + $0x1e4] ss:$16 sps:$4 sm:$0xff]  }
  0x69   : > { %v1332_v62 = vld [vmem:[#allocation5 + $0x1ec] ss:$16 sps:$4 sm:$0xff]   ;;  %v1334_v63 = vld [vmem:[#allocation5 + $0x1e0] ss:$16 sps:$4 sm:$0xff]   ;;  %v1335_v0 = vld [vmem:[#allocation5 + $0x1e8] ss:$16 sps:$4 sm:$0xff]  }
  0x6a   : > { %647 = vmatpush1.bf16.msra.mxu0 %v1274_v22  ;;  %720 = vmatpush1.bf16.msra.mxu1 %v1275_v23  ;;  %v1336_v1 = vld [vmem:[%s1624_s4] ss:$8 sps:$4 sm:$0xff]   ;;  %v1339_v2 = vld [vmem:[%s1624_s4 + $0x14] ss:$8 sps:$4 sm:$0xff]   ;;  %v1341_v3 = vld [vmem:[%s1624_s4 + $0x10] ss:$8 sps:$4 sm:$0xff]  }
  0x6b   : > { %648 = vmatprep.subr.bf16.mxu0 %v1276_v24  ;;  %721 = vmatprep.subr.bf16.mxu1 %v1278_v25  ;;  %v1342_v4 = vld [vmem:[%s1624_s4 + $0x24] ss:$8 sps:$4 sm:$0xff]   ;;  %v1344_v5 = vld [vmem:[%s1624_s4 + $0x20] ss:$8 sps:$4 sm:$0xff]   ;;  %v1345_v6 = vld [vmem:[%s1624_s4 + $0x34] ss:$8 sps:$4 sm:$0xff]  }
  0x6c   : > { %v1347_v7 = vld [vmem:[%s1624_s4 + $0x30] ss:$8 sps:$4 sm:$0xff]   ;;  %s1092_s19 = sshll.u32 %s1620_s28, 5  ;;  %s1172_s20 = sshll.u32 %s1526_s13, 9 }
  0x6d   : > { %s202_s23 = scalar_lea.vmem [#allocation7], %s1092_s19  ;;  %s1811_s5 = scalar_lea.hbm %s1857_s2, %s1172_s20 }
  0x6e   : > { %649 = vmatpush1.bf16.msra.mxu0 %v1280_v26  ;;  %722 = vmatpush1.bf16.msra.mxu1 %v1281_v27  ;;  %s999_s17 = sshll.u32 %s202_s23, 4  ;;  %s985_s6 = scalar_lea.sflag [#allocation4], %s1620_s28  ;;  %s1813_s17 = int_to_ptr.vmem [resolvable:$true] %s999_s17 }
  0x6f   : > { %650 = vmatprep.subr.bf16.mxu0 %v1282_v28  ;;  %723 = vmatprep.subr.bf16.mxu1 %v1284_v29  ;;  %s1408_s13 = scalar_lea.vmem %s1813_s17, 512  ;;  %p1874_p2 = scmp.ne.s32.totalorder %s1865_s21, 0 }
  0x70   : > { %p1409_p13 = scmp.ne.s32.totalorder %s1813_s17, %s1408_s13  ;;  %s1489_s7 = smov [#allocation7]  }
  0x71   : > { %s1412_s8 = sshll.u32 %s1489_s7, 4  ;;  %s1413_s8 = int_to_ptr.vmem [resolvable:$false] %s1412_s8 }
  0x72   : > { %651 = vmatpush1.bf16.msra.mxu0 %v1286_v30  ;;  %724 = vmatpush1.bf16.msra.mxu1 %v1287_v31  ;;  %p1410_p3 = pnand %p1409_p13, %p1874_p2  ;;  %s1414_s14 = scalar_lea.vmem %s1413_s8, 1024 }
  0x73   : > { %652 = vmatprep.subr.bf16.mxu0 %v1288_v32  ;;  %725 = vmatprep.subr.bf16.mxu1 %v1290_v33  ;;  %p1415_p8 = scmp.lt.s32.totalorder %s1813_s17, %s1413_s8  ;;  %p1416_p9 = scmp.lt.s32.totalorder %s1414_s14, %s1408_s13 }
  0x74   : > { %p1411_p7 = pneg %p1410_p3 }
  0x75   : > { %p1417_p10 = por %p1416_p9, %p1415_p8 }
  0x76   : > { %653 = vmatpush1.bf16.msra.mxu0 %v1292_v34  ;;  %726 = vmatpush1.bf16.msra.mxu1 %v1293_v35 }
  0x77   : > { %654 = vmatprep.subr.bf16.mxu0 %v1294_v36  ;;  %727 = vmatprep.subr.bf16.mxu1 %v1296_v37  ;;  %p1418_p1 = pnand %p1417_p10, %p1411_p7 }
  0x7a   : > { %655 = vmatpush1.bf16.msra.mxu0 %v1298_v38  ;;  %728 = vmatpush1.bf16.msra.mxu1 %v1299_v39 }
  0x7b   : > { %656 = vmatprep.subr.bf16.mxu0 %v1300_v40  ;;  %729 = vmatprep.subr.bf16.mxu1 %v1302_v41 }
  0x7e   : > { %657 = vmatpush1.bf16.msra.mxu0 %v1304_v42  ;;  %730 = vmatpush1.bf16.msra.mxu1 %v1305_v43 }
  0x7f   : > { %658 = vmatprep.subr.bf16.mxu0 %v1306_v44  ;;  %731 = vmatprep.subr.bf16.mxu1 %v1308_v45 }
  0x82   : > { %659 = vmatpush1.bf16.msra.mxu0 %v1310_v46  ;;  %732 = vmatpush1.bf16.msra.mxu1 %v1311_v47 }
  0x83   : > { %660 = vmatprep.subr.bf16.mxu0 %v1312_v49  ;;  %733 = vmatprep.subr.bf16.mxu1 %v1314_v50 }
  0x86   : > { %661 = vmatpush1.bf16.msra.mxu0 %v1316_v51  ;;  %734 = vmatpush1.bf16.msra.mxu1 %v1317_v52 }
  0x87   : > { %662 = vmatprep.subr.bf16.mxu0 %v1318_v53  ;;  %735 = vmatprep.subr.bf16.mxu1 %v1320_v54 }
  0x8a   : > { %663 = vmatpush1.bf16.msra.mxu0 %v1322_v55  ;;  %736 = vmatpush1.bf16.msra.mxu1 %v1323_v56 }
  0x8b   : > { %664 = vmatprep.subr.bf16.mxu0 %v1324_v57  ;;  %737 = vmatprep.subr.bf16.mxu1 %v1326_v58 }
  0x8e   : > { %665 = vmatpush1.bf16.msra.mxu0 %v1328_v59  ;;  %738 = vmatpush1.bf16.msra.mxu1 %v1329_v60 }
  0x8f   : > { %666 = vmatprep.subr.bf16.mxu0 %v1330_v61  ;;  %739 = vmatprep.subr.bf16.mxu1 %v1332_v62 }
  0x92   : > { %667 = vmatpush1.bf16.msra.mxu0 %v1334_v63  ;;  %740 = vmatpush1.bf16.msra.mxu1 %v1335_v0 }
  0x95   : > { %669 = vmatmul.mubr.bf16.vlgmr.msra.gmra.mrb[0].mxu0 %v1336_v1  ;;  %742 = vmatmul.mubr.bf16.vlgmr.msra.gmra.mrb[0].mxu1 %v1336_v1 }
  0x96   : > { %678 = vmatprep.mubr.bf16.mxu0 %v1339_v2  ;;  %751 = vmatprep.mubr.bf16.mxu1 %v1339_v2 }
  0x9d   : > { %679 = vmatmul.mubr.bf16.gmra.mrb[4].mxu0 %v1341_v3  ;;  %752 = vmatmul.mubr.bf16.gmra.mrb[4].mxu1 %v1341_v3 }
  0x9e   : > { %688 = vmatprep.mubr.bf16.mxu0 %v1342_v4  ;;  %761 = vmatprep.mubr.bf16.mxu1 %v1342_v4 }
  0xa5   : > { %689 = vmatmul.mubr.bf16.gmra.mrb[8].mxu0 %v1344_v5  ;;  %762 = vmatmul.mubr.bf16.gmra.mrb[8].mxu1 %v1344_v5 }
  0xa6   : > { %698 = vmatprep.mubr.bf16.mxu0 %v1345_v6  ;;  %771 = vmatprep.mubr.bf16.mxu1 %v1345_v6 }
  0xad   : > { %699 = vmatmul.mubr.bf16.gmra.mrb[12].mxu0 %v1347_v7  ;;  %772 = vmatmul.mubr.bf16.gmra.mrb[12].mxu1 %v1347_v7 }
 0x168   : > { %v670_v8 = vpop.f32.mrb[0].mxu0  ;;  %v743_v9 = vpop.f32.mrb[0].mxu1 }
 0x169   : > { %v782_v10 = vmul.f32 %v670_v8, %v670_v8  ;;  %v784_v11 = vmul.f32 %v743_v9, %v743_v9  ;;  %v672_v12 = vpop.f32.mrb[1].mxu0  ;;  %v745_v13 = vpop.f32.mrb[1].mxu1 }
 0x16a   : > { %v783_v14 = vmul.f32 %v672_v12, %v672_v12  ;;  %v785_v15 = vmul.f32 %v745_v13, %v745_v13  ;;  %v674_v16 = vpop.f32.mrb[2].mxu0  ;;  %v747_v17 = vpop.f32.mrb[2].mxu1 }
 0x16b   : > { %v814_v18 = vadd.f32 %v784_v11, %v782_v10  ;;  %v786_v19 = vmul.f32 %v674_v16, %v674_v16  ;;  %v788_v20 = vmul.f32 %v747_v17, %v747_v17  ;;  %v676_v21 = vpop.f32.mrb[3].mxu0  ;;  %v749_v22 = vpop.f32.mrb[3].mxu1 }
 0x16c   : > { %v815_v23 = vadd.f32 %v785_v15, %v783_v14  ;;  %v787_v24 = vmul.f32 %v676_v21, %v676_v21  ;;  %v789_v25 = vmul.f32 %v749_v22, %v749_v22 }
 0x16d   : > { %v816_v26 = vadd.f32 %v788_v20, %v786_v19  ;;  %v1642_v38 = vadd.f32 1e-14, %v814_v18 }
 0x16e   : > { %v817_v27 = vadd.f32 %v789_v25, %v787_v24  ;;  %v1644_v41 = vadd.f32 1e-14, %v815_v23 }
 0x16f   : > { %v1646_v42 = vadd.f32 1e-14, %v816_v26  ;;  %1348 = vrsqrt.f32 %v1642_v38  ;;  %vm848_vm0 = vcmp.eq.f32.partialorder %v1642_v38, inf  ;;  %v851_v1 = vand.u32 2147483648, %v1642_v38 }
 0x170   : > { %v680_v28 = vpop.f32.mrb[4].mxu0  ;;  %v753_v29 = vpop.f32.mrb[4].mxu1  ;;  %1350 = vrsqrt.f32 %v1644_v41  ;;  %v1650_v50 = vadd.f32 1e-14, %v817_v27  ;;  %vm855_vm1 = vcmp.eq.f32.partialorder %v1644_v41, inf  ;;  %vm850_vm2 = vcmp.eq.f32.partialorder %v1642_v38, 0.0 }
 0x171   : > { %v790_v30 = vmul.f32 %v680_v28, %v680_v28  ;;  %v792_v31 = vmul.f32 %v753_v29, %v753_v29  ;;  %v682_v32 = vpop.f32.mrb[5].mxu0  ;;  %v755_v33 = vpop.f32.mrb[5].mxu1  ;;  %1352 = vrsqrt.f32 %v1646_v42  ;;  %vm857_vm3 = vcmp.eq.f32.partialorder %v1644_v41, 0.0 }
 0x172   : > { %v791_v34 = vmul.f32 %v682_v32, %v682_v32  ;;  %v793_v35 = vmul.f32 %v755_v33, %v755_v33  ;;  %v684_v36 = vpop.f32.mrb[6].mxu0  ;;  %v757_v37 = vpop.f32.mrb[6].mxu1  ;;  %1354 = vrsqrt.f32 %v1650_v50  ;;  %v858_v24 = vand.u32 2147483648, %v1644_v41 }
 0x173   : > { %v686_v39 = vpop.f32.mrb[7].mxu0  ;;  %v759_v40 = vpop.f32.mrb[7].mxu1  ;;  %v818_v43 = vadd.f32 %v792_v31, %v790_v30  ;;  %v794_v45 = vmul.f32 %v684_v36, %v684_v36  ;;  %v796_v46 = vmul.f32 %v757_v37, %v757_v37  ;;  %vm862_vm4 = vcmp.eq.f32.partialorder %v1646_v42, inf }
 0x174   : > { %v819_v44 = vadd.f32 %v793_v35, %v791_v34  ;;  %v795_v47 = vmul.f32 %v686_v39, %v686_v39  ;;  %v797_v48 = vmul.f32 %v759_v40, %v759_v40  ;;  %vm864_vm5 = vcmp.eq.f32.partialorder %v1646_v42, 0.0 }
 0x175   : > { %v820_v49 = vadd.f32 %v796_v46, %v794_v45  ;;  %v1654_v62 = vadd.f32 1e-14, %v818_v43  ;;  %v865_v34 = vand.u32 2147483648, %v1646_v42  ;;  %vm869_vm6 = vcmp.eq.f32.partialorder %v1650_v50, inf }
 0x176   : > { %v821_v51 = vadd.f32 %v797_v48, %v795_v47  ;;  %v1656_v63 = vadd.f32 1e-14, %v819_v44  ;;  %vm871_vm7 = vcmp.eq.f32.partialorder %v1650_v50, 0.0  ;;  %v872_v36 = vand.u32 2147483648, %v1650_v50 }
 0x177   : > { %1356 = vrsqrt.f32 %v1654_v62  ;;  %v1669_v25 = vadd.f32 1e-14, %v820_v49  ;;  %v879_v37 = vand.u32 2147483648, %v1654_v62  ;;  %vm876_vm8 = vcmp.eq.f32.partialorder %v1654_v62, inf }
 0x178   : > { %v690_v52 = vpop.f32.mrb[8].mxu0  ;;  %v763_v53 = vpop.f32.mrb[8].mxu1  ;;  %1358 = vrsqrt.f32 %v1656_v63  ;;  %v1682_v35 = vadd.f32 1e-14, %v821_v51  ;;  %vm883_vm9 = vcmp.eq.f32.partialorder %v1656_v63, inf  ;;  %vm878_vm12 = vcmp.eq.f32.partialorder %v1654_v62, 0.0 }
 0x179   : > { %v692_v54 = vpop.f32.mrb[9].mxu0  ;;  %v765_v55 = vpop.f32.mrb[9].mxu1  ;;  %v798_v59 = vmul.f32 %v690_v52, %v690_v52  ;;  %v800_v60 = vmul.f32 %v763_v53, %v763_v53  ;;  %vm885_vm13 = vcmp.eq.f32.partialorder %v1656_v63, 0.0  ;;  %vm890_vm14 = vcmp.eq.f32.partialorder %v1669_v25, inf }
 0x17a   : > { %v694_v56 = vpop.f32.mrb[10].mxu0  ;;  %v767_v57 = vpop.f32.mrb[10].mxu1  ;;  %v799_v0 = vmul.f32 %v692_v54, %v692_v54  ;;  %v801_v3 = vmul.f32 %v765_v55, %v765_v55  ;;  %v886_v55 = vand.u32 2147483648, %v1656_v63 }
 0x17b   : > { %v696_v58 = vpop.f32.mrb[11].mxu0  ;;  %v769_v61 = vpop.f32.mrb[11].mxu1  ;;  %v822_v2 = vadd.f32 %v800_v60, %v798_v59  ;;  %v802_v7 = vmul.f32 %v694_v56, %v694_v56  ;;  %v804_v8 = vmul.f32 %v767_v57, %v767_v57 }
 0x17c   : > { %v1349_v6 = vpop.eup %1348  ;;  %v823_v13 = vadd.f32 %v801_v3, %v799_v0  ;;  %v803_v14 = vmul.f32 %v696_v58, %v696_v58  ;;  %v805_v19 = vmul.f32 %v769_v61, %v769_v61  ;;  %v893_v58 = vand.u32 2147483648, %v1669_v25 }
 0x17d   : > { %v1351_v11 = vpop.eup %1350  ;;  %v1663_v12 = vadd.f32 1e-14, %v822_v2  ;;  %v824_v18 = vadd.f32 %v804_v8, %v802_v7  ;;  %v847_v26 = vmul.f32 %v1349_v6, %v1642_v38 }
 0x17e   : > { %v1353_v17 = vpop.eup %1352  ;;  %v854_v27 = vmul.f32 %v1351_v11, %v1644_v41  ;;  %v1674_v28 = vadd.f32 1e-14, %v823_v13  ;;  %v825_v32 = vadd.f32 %v805_v19, %v803_v14 }
 0x17f   : > { %1360 = vrsqrt.f32 %v1663_v12  ;;  %v1676_v29 = vadd.f32 1e-14, %v824_v18  ;;  %v1355_v30 = vpop.eup %1354  ;;  %v861_v31 = vmul.f32 %v1353_v17, %v1646_v42  ;;  %v849_v39 = vsel %vm848_vm0, %v1642_v38, %v847_v26 }
 0x180   : > { %v700_v4 = vpop.f32.mrb[12].mxu0  ;;  %v773_v5 = vpop.f32.mrb[12].mxu1  ;;  %1362 = vrsqrt.f32 %v1674_v28  ;;  %v856_v40 = vsel %vm855_vm1, %v1644_v41, %v854_v27  ;;  %v868_v43 = vmul.f32 %v1355_v30, %v1650_v50  ;;  %v1701_v45 = vadd.f32 1e-14, %v825_v32 }
 0x181   : > { %v702_v9 = vpop.f32.mrb[13].mxu0  ;;  %v775_v10 = vpop.f32.mrb[13].mxu1  ;;  %v806_v20 = vmul.f32 %v700_v4, %v700_v4  ;;  %v808_v21 = vmul.f32 %v773_v5, %v773_v5  ;;  %1364 = vrsqrt.f32 %v1669_v25  ;;  %v863_v44 = vsel %vm862_vm4, %v1646_v42, %v861_v31 }
 0x182   : > { %v704_v15 = vpop.f32.mrb[14].mxu0  ;;  %v777_v16 = vpop.f32.mrb[14].mxu1  ;;  %1366 = vrsqrt.f32 %v1676_v29  ;;  %v807_v47 = vmul.f32 %v702_v9, %v702_v9  ;;  %v809_v49 = vmul.f32 %v775_v10, %v775_v10  ;;  %v852_v54 = vsel %vm850_vm2, %v851_v1, %v849_v39 }
 0x183   : > { %v706_v22 = vpop.f32.mrb[15].mxu0  ;;  %v779_v23 = vpop.f32.mrb[15].mxu1  ;;  %v826_v33 = vadd.f32 %v808_v21, %v806_v20  ;;  %1368 = vrsqrt.f32 %v1682_v35  ;;  %v810_v51 = vmul.f32 %v704_v15, %v704_v15  ;;  %v812_v52 = vmul.f32 %v777_v16, %v777_v16 }
 0x184   : > { %v1357_v48 = vpop.eup %1356  ;;  %1370 = vrsqrt.f32 %v1701_v45  ;;  %v859_v56 = vsel %vm857_vm3, %v858_v24, %v856_v40  ;;  %v866_v57 = vsel %vm864_vm5, %v865_v34, %v863_v44  ;;  %v870_v38 = vsel %vm869_vm6, %v1650_v50, %v868_v43 }
 0x185   : > { %v1703_v46 = vadd.f32 1e-14, %v826_v33  ;;  %v1359_v53 = vpop.eup %1358  ;;  %v875_v60 = vmul.f32 %v1357_v48, %v1654_v62  ;;  %v827_v61 = vadd.f32 %v809_v49, %v807_v47  ;;  %v828_v0 = vadd.f32 %v812_v52, %v810_v51 }
 0x186   : > { %vm904_vm10 = vcmp.eq.f32.partialorder %v1663_v12, inf  ;;  %v811_v41 = vmul.f32 %v706_v22, %v706_v22  ;;  %v813_v42 = vmul.f32 %v779_v23, %v779_v23  ;;  %v882_v2 = vmul.f32 %v1359_v53, %v1656_v63 }
 0x187   : > { %1372 = vrsqrt.f32 %v1703_v46  ;;  %v907_v3 = vand.u32 2147483648, %v1663_v12  ;;  %v1727_v4 = vadd.f32 1e-14, %v827_v61  ;;  %v1729_v5 = vadd.f32 1e-14, %v828_v0 }
 0x188   : > { %v873_v7 = vsel %vm871_vm7, %v872_v36, %v870_v38  ;;  %vm906_vm11 = vcmp.eq.f32.partialorder %v1663_v12, 0.0  ;;  %v829_v9 = vadd.f32 %v813_v42, %v811_v41  ;;  %v877_v11 = vsel %vm876_vm8, %v1654_v62, %v875_v60 }
 0x189   : > { %v1361_v59 = vpop.eup %1360  ;;  %1374 = vrsqrt.f32 %v1727_v4  ;;  %vm911_vm15 = vcmp.eq.f32.partialorder %v1674_v28, inf  ;;  %v884_v16 = vsel %vm883_vm9, %v1656_v63, %v882_v2  ;;  %vm913_vm0 = vcmp.eq.f32.partialorder %v1674_v28, 0.0 }
 0x18a   : > { %v903_v1 = vmul.f32 %v1361_v59, %v1663_v12  ;;  %v1363_v6 = vpop.eup %1362  ;;  %1376 = vrsqrt.f32 %v1729_v5  ;;  %vm918_vm1 = vcmp.eq.f32.partialorder %v1676_v29, inf  ;;  %v921_v21 = vand.u32 2147483648, %v1676_v29 }
 0x18b   : > { %v1365_v10 = vpop.eup %1364  ;;  %v910_v14 = vmul.f32 %v1363_v6, %v1674_v28  ;;  %v1754_v22 = vadd.f32 1e-14, %v829_v9  ;;  %vm920_vm2 = vcmp.eq.f32.partialorder %v1676_v29, 0.0  ;;  %vm925_vm3 = vcmp.eq.f32.partialorder %v1701_v45, inf }
 0x18c   : > { %v905_v8 = vsel %vm904_vm10, %v1663_v12, %v903_v1  ;;  %v1367_v50 = vpop.eup %1366  ;;  %v914_v12 = vand.u32 2147483648, %v1674_v28  ;;  %v889_v24 = vmul.f32 %v1365_v10, %v1669_v25  ;;  %vm892_vm4 = vcmp.eq.f32.partialorder %v1669_v25, 0.0 }
 0x18d   : > { %v908_v13 = vsel %vm906_vm11, %v907_v3, %v905_v8  ;;  %v912_v17 = vsel %vm911_vm15, %v1674_v28, %v910_v14  ;;  %v917_v18 = vmul.f32 %v1367_v50, %v1676_v29  ;;  %v1369_v19 = vpop.eup %1368  ;;  %1378 = vrsqrt.f32 %v1754_v22 }
 0x18e   : > { %v958_v15 = vsub.f32 %v852_v54, %v908_v13  ;;  %v915_v20 = vsel %vm913_vm0, %v914_v12, %v912_v17  ;;  %v1371_v23 = vpop.eup %1370  ;;  %vm927_vm5 = vcmp.eq.f32.partialorder %v1701_v45, 0.0  ;;  %v928_v33 = vand.u32 2147483648, %v1701_v45 }
 0x18f   : > { %v959_v26 = vsub.f32 %v859_v56, %v915_v20  ;;  %v919_v27 = vsel %vm918_vm1, %v1676_v29, %v917_v18  ;;  %v924_v31 = vmul.f32 %v1371_v23, %v1701_v45  ;;  %vm932_vm6 = vcmp.eq.f32.partialorder %v1703_v46, inf }
 0x190   : > { %v922_v28 = vsel %vm920_vm2, %v921_v21, %v919_v27  ;;  %vm934_vm7 = vcmp.eq.f32.partialorder %v1703_v46, 0.0  ;;  %v935_v29 = vand.u32 2147483648, %v1703_v46  ;;  %v966_v39 = vmul.f32 %v958_v15, %v958_v15 }
 0x191   : > { %v1373_v30 = vpop.eup %1372  ;;  %v960_v32 = vsub.f32 %v866_v57, %v922_v28  ;;  %v926_v36 = vsel %vm925_vm3, %v1701_v45, %v924_v31  ;;  %v880_v47 = vsel %vm878_vm12, %v879_v37, %v877_v11  ;;  %v887_v45 = vsel %vm885_vm13, %v886_v55, %v884_v16 }
 0x192   : > { %v931_v34 = vmul.f32 %v1373_v30, %v1703_v46  ;;  %v929_v43 = vsel %vm927_vm5, %v928_v33, %v926_v36  ;;  %v891_v52 = vsel %vm890_vm14, %v1669_v25, %v889_v24  ;;  %v896_v53 = vmul.f32 %v1369_v19, %v1682_v35 }
 0x193   : > { %v968_v40 = vmul.f32 %v960_v32, %v960_v32  ;;  %v961_v48 = vsub.f32 %v873_v7, %v929_v43  ;;  %v1375_v51 = vpop.eup %1374  ;;  %v967_v57 = vmul.f32 %v959_v26, %v959_v26  ;;  %vm939_vm8 = vcmp.eq.f32.partialorder %v1727_v4, inf }
 0x194   : > { %v933_v44 = vsel %vm932_vm6, %v1703_v46, %v931_v34  ;;  %v1377_v56 = vpop.eup %1376  ;;  %v938_v37 = vmul.f32 %v1375_v51, %v1727_v4  ;;  %vm941_vm9 = vcmp.eq.f32.partialorder %v1727_v4, 0.0  ;;  %v942_v63 = vand.u32 2147483648, %v1727_v4 }
 0x195   : > { %v936_v49 = vsel %vm934_vm7, %v935_v29, %v933_v44  ;;  %v974_v54 = vadd.f32 %v968_v40, %v966_v39  ;;  %v969_v62 = vmul.f32 %v961_v48, %v961_v48  ;;  %v945_v55 = vmul.f32 %v1377_v56, %v1729_v5 }
 0x196   : > { %v962_v46 = vsub.f32 %v880_v47, %v936_v49  ;;  %v940_v38 = vsel %vm939_vm8, %v1727_v4, %v938_v37  ;;  %vm946_vm10 = vcmp.eq.f32.partialorder %v1729_v5, inf  ;;  %v949_v60 = vand.u32 2147483648, %v1729_v5 }
 0x197   : > { %v977_v61 = vadd.f32 %v969_v62, %v967_v57  ;;  %v943_v0 = vsel %vm941_vm9, %v942_v63, %v940_v38  ;;  %v947_v1 = vsel %vm946_vm10, %v1729_v5, %v945_v55  ;;  %vm948_vm11 = vcmp.eq.f32.partialorder %v1729_v5, 0.0  ;;  %v1379_v42 = vpop.eup %1378 }
 0x198   : > { %v970_v59 = vmul.f32 %v962_v46, %v962_v46  ;;  %v894_v2 = vsel %vm892_vm4, %v893_v58, %v891_v52  ;;  %vm897_vm12 = vcmp.eq.f32.partialorder %v1682_v35, inf  ;;  %v963_v3 = vsub.f32 %v887_v45, %v943_v0 }
 0x199   : > { %v950_v4 = vsel %vm948_vm11, %v949_v60, %v947_v1  ;;  %v898_v6 = vsel %vm897_vm12, %v1682_v35, %v896_v53  ;;  %v952_v7 = vmul.f32 %v1379_v42, %v1754_v22  ;;  %v900_v5 = vand.u32 2147483648, %v1682_v35 }
 0x19a   : > { %v975_v41 = vadd.f32 %v974_v54, %v970_v59  ;;  %v964_v8 = vsub.f32 %v894_v2, %v950_v4  ;;  %vm953_vm13 = vcmp.eq.f32.partialorder %v1754_v22, inf  ;;  %v956_v9 = vand.u32 2147483648, %v1754_v22 }
 0x19b   : > { %v971_v10 = vmul.f32 %v963_v3, %v963_v3  ;;  %vm899_vm14 = vcmp.eq.f32.partialorder %v1682_v35, 0.0  ;;  %v954_v25 = vsel %vm953_vm13, %v1754_v22, %v952_v7  ;;  %vm955_vm15 = vcmp.eq.f32.partialorder %v1754_v22, 0.0 }
 0x19c   : > { %v972_v58 = vmul.f32 %v964_v8, %v964_v8  ;;  %v901_v11 = vsel %vm899_vm14, %v900_v5, %v898_v6  ;;  %v957_v13 = vsel %vm955_vm15, %v956_v9, %v954_v25 }
 0x19d   : > { %v978_v14 = vadd.f32 %v977_v61, %v971_v10  ;;  %v965_v50 = vsub.f32 %v901_v11, %v957_v13 }
 0x19e   : > { %v976_v15 = vadd.f32 %v975_v41, %v972_v58 }
 0x19f   : > { %v973_v12 = vmul.f32 %v965_v50, %v965_v50 }
 0x1a0   : > { %980 = vst [vmem:[%s202_s23] sm:$0xff] %v976_v15  ;;  %982 = vst [vmem:[%s202_s23 + $0x10] sm:$0xff] %v976_v15 }
 0x1a1   : > { %v979_v16 = vadd.f32 %v978_v14, %v973_v12 }
 0x1a3   : > { %981 = vst [vmem:[%s202_s23 + $0x8] sm:$0xff] %v979_v16  ;;  %983 = vst [vmem:[%s202_s23 + $0x18] sm:$0xff] %v979_v16 }
 0x1a4   : > { %1421 = shalt.err (!%p1418_p1)
}
 0x1a5   : > { %s1422_s16 = scalar_lea.hbm %s1811_s5, 512  ;;  %s1426_s27 = scalar_lea.hbm %s1857_s2, 1024 }
 0x1a6   : > { %p1423_p4 = scmp.ne.s32.totalorder %s1811_s5, %s1422_s16  ;;  %p1427_p11 = scmp.lt.u32.totalorder %s1811_s5, %s1857_s2 }
 0x1a7   : > { %p1428_p12 = scmp.lt.u32.totalorder %s1426_s27, %s1422_s16  ;;  %p1430_p3 = scmp.lt.u32.totalorder %s1422_s16, %s1811_s5 }
 0x1a8   : > { %p1424_p5 = pnand %p1423_p4, %p1874_p2 }
 0x1a9   : > { %p1429_p13 = por %p1428_p12, %p1427_p11 }
 0x1aa   : > { %p1425_p6 = pneg %p1424_p5 }
 0x1ab   : > { %p1431_p7 = por %p1430_p3, %p1429_p13 }
 0x1ad   : > { %p1432_p8 = pnand %p1431_p7, %p1425_p6 }
 0x1af   : > { %1435 = shalt.err (!%p1432_p8)
}
 0x1b0   : > { %1186 = dma.vmem_to_hbm [thread:$0]  (%p1874_p2), %s1813_s17, 512, %s1811_s5, %s985_s6  }
 0x1b1 PF: > { %s1011_s30 = sand.u32 1, %s1466_s9   ;;  %p1875_p9 = scmp.ne.s32.totalorder %s1866_s22, 0 }
 0x1b2   : > { %s1012_s4 = scalar_lea.sflag [#allocation4], %s1011_s30 }
 0x1b3   : > { %p1193_p10 = pnand %p1082_p0, %p1875_p9 }
 0x1b5   : > { %1461 = dma.done.wait (!%p1193_p10), %s1012_s4, 512  }
 0x1b6   : > { %1463 = vsyncadd (!%p1193_p10), %s1012_s4, 4294966784  ;;  %p16_p1 = scmp.ge.s32.totalorder %s1530_s15, 4   ;;  %s1876_s9 = smov %s1470_s10 }
 0x1b7   : > { %s1877_s10 = smov %s1474_s11  ;;  %s1878_s11 = smov %s1542_s18 }
 0x1b8   : > { %s1879_s12 = smov %s1530_s15  ;;  %18 = sbr.rel (!%p16_p1) target bundleno = 6 (0x6), region = 82 }
 0x1bf   :  { %1017 = vsyncpa [#allocation3], 1 }
 0x1c0   :  { %1019 = vsyncpa [#allocation3 + $0x1], 1 }
 0x1c1   :  { %1020 = vsyncpa [#allocation6], 1 }
 0x1c2   :  { %1021 = vsyncpa [#allocation4], 1 }
 0x1c3   :  { %1023 = vsyncpa [#allocation4 + $0x1], 1 }

</bundles_post_ra>
